<compile_context>
chip_gen: v7x
topology: tpu7x:2x2x1
jax: 0.10.0
libtpu: 0.0.40
codegen_flags: <defaults>
</compile_context>

<pallas_src>
import functools

import jax
import jax.numpy as jnp
from jax.experimental import pallas as pl
from jax.experimental.pallas import tpu as pltpu

_LANE = 128
_SUBLANE = 8
_SMALL_C_MAX = 128          # class-major path threshold


def _round_up(x, m):
    return (x + m - 1) // m * m


def _chip_config():
    """Best-effort TPU-generation detection with safe fallbacks."""
    vmem_bytes = 64 * 1024 * 1024            # conservative default (v7x-sized)
    kind = ""
    try:
        vmem_bytes = int(pltpu.get_tpu_info().vmem_capacity_bytes)
    except Exception:
        pass
    try:
        kind = jax.devices()[0].device_kind.lower()
    except Exception:
        pass
    small_vmem = vmem_bytes <= 80 * 1024 * 1024          # v7x: 64 MiB per TC
    return dict(
        # v5e has no bf16 VPU -> compare sub-32-bit floats in f32 there only.
        upcast_small_float="v5" in kind,
        # Two TensorCores per chip only on v7x; on single-TC chips the split
        # just costs a redundant masked tile + a pipeline drain.
        num_splits=2 if "v7" in kind else 1,
        tile_budget=(12 if small_vmem else 28) * 1024 * 1024,
        vmem_limit=(32 if small_vmem else 64) * 1024 * 1024,
    )


# --------------------------------------------------------------------------
# Class-major kernel (C <= 128): batch on lanes, classes on sublanes.
# --------------------------------------------------------------------------
def _class_major_kernel(pred_ref, label_ref, out_ref, acc_ref, *,
                        n_total, steps_per_split, upcast):
    s = pl.program_id(0)            # split index (outer, "parallel")
    t = pl.program_id(1)            # tile index within split (reduction)

    @pl.when(t == 0)
    def _():
        acc_ref[...] = jnp.zeros_like(acc_ref)

    x = pred_ref[...]               # (C, tile_n) in the input's native dtype
    if upcast:                      # v5e only: no bf16 VPU
        x = x.astype(jnp.float32)
    labels = label_ref[...]         # (1, tile_n) int32, lane-dense
    c, tn = x.shape

    # Mask columns past the true batch size (partial last tile / clamped tiles).
    tile_idx = s * steps_per_split + t          # un-clamped logical tile index
    col = jax.lax.broadcasted_iota(jnp.int32, (1, tn), 1)
    valid = (col + tile_idx * tn) < n_total

    # Per-sample argmax over the class (sublane) axis; first-occurrence
    # tie-break matches torch.max(y_pred, 1) / jnp.argmax.
    max_vals = jnp.max(x, axis=0, keepdims=True)                        # (1, tn)
    class_idx = jax.lax.broadcasted_iota(jnp.int32, (c, tn), 0)
    argmax = jnp.min(jnp.where(x == max_vals, class_idx, jnp.int32(c)),
                     axis=0, keepdims=True)                             # (1, tn)

    # Lane-dense VMEM vector accumulation: one VPU add per step, no per-step
    # XLU reduce and no SMEM scalar loop-carried dependency.
    correct = jnp.logical_and(argmax == labels, valid)
    acc_ref[...] += correct.astype(jnp.int32)

    # Finalize this split: single reduce + lane-dense (1, 128) int32 write.
    @pl.when(t == steps_per_split - 1)
    def _():
        total = jnp.sum(acc_ref[...], axis=1, keepdims=True)            # (1, 1)
        out_ref[...] = jnp.broadcast_to(total, (1, _LANE))


# --------------------------------------------------------------------------
# Row-major kernel (C > 128): rows on sublanes, classes on lanes.
# --------------------------------------------------------------------------
def _row_major_kernel(pred_ref, label_ref, out_ref, count_ref, *,
                      n_total, steps_per_split, upcast):
    s = pl.program_id(0)
    t = pl.program_id(1)

    @pl.when(t == 0)
    def _():
        count_ref[0] = jnp.int32(0)

    x = pred_ref[...]               # (tile_rows, C), native dtype
    if upcast:
        x = x.astype(jnp.float32)
    labels = label_ref[...]         # (tile_rows, 1) int32
    tr, c = x.shape

    tile_idx = s * steps_per_split + t
    row = jax.lax.broadcasted_iota(jnp.int32, (tr, 1), 0)
    valid = (row + tile_idx * tr) < n_total

    max_vals = jnp.max(x, axis=-1, keepdims=True)                       # (tr, 1)
    class_idx = jax.lax.broadcasted_iota(jnp.int32, (tr, c), 1)
    argmax = jnp.min(jnp.where(x == max_vals, class_idx, jnp.int32(c)),
                     axis=-1, keepdims=True)                            # (tr, 1)

    correct = jnp.logical_and(argmax == labels, valid)
    count_ref[0] += jnp.sum(correct.astype(jnp.int32))

    @pl.when(t == steps_per_split - 1)
    def _():
        out_ref[...] = jnp.full((1, _LANE), count_ref[0], dtype=jnp.int32)


def _finish(counts, num_splits, n):
    total = jnp.sum(counts.reshape(num_splits, _LANE)[:, 0])
    return total.astype(jnp.float32) / jnp.float32(n)


def _upcast_flag(cfg, dtype):
    return bool(cfg["upcast_small_float"]
                and jnp.issubdtype(dtype, jnp.floating)
                and dtype.itemsize < 4)


def _accuracy_class_major(y_pred, y_true, cfg, num_splits, tile_n):
    n, c = y_pred.shape
    # Class-major layout: fully lane-dense pred & label DMA.  Producers that
    # can emit (C, N) logits directly would skip this wrapper transpose.
    pred_t = jnp.transpose(y_pred)                       # (C, N)
    labels = y_true.astype(jnp.int32).reshape(1, n)      # (1, N) lane-dense

    itemsize = y_pred.dtype.itemsize
    if tile_n is None:
        c_sub = max(_round_up(c, _SUBLANE), _SUBLANE)
        # pred double-buffer + int32 temporaries + label/acc buffers, per lane.
        per_lane = 2 * c_sub * itemsize + 2 * c_sub * 4 + 128
        tile_n = cfg["tile_budget"] // per_lane
    tile_n = min(int(tile_n), 1 << 16)
    if tile_n >= n or n < _LANE:
        tile_n = n                                       # single / full-dim tile
    else:
        tile_n = max(_LANE, (tile_n // _LANE) * _LANE)   # lane rule

    num_tiles = pl.cdiv(n, tile_n)
    num_splits = max(1, min(num_splits, num_tiles))
    steps_per_split = pl.cdiv(num_tiles, num_splits)

    def tile_index(s, t):
        # Clamp so steps past the last real tile re-read a valid tile;
        # their lanes are masked inside the kernel (zero contribution).
        return jnp.minimum(s * steps_per_split + t, num_tiles - 1)

    kernel = functools.partial(_class_major_kernel, n_total=n,
                               steps_per_split=steps_per_split,
                               upcast=_upcast_flag(cfg, y_pred.dtype))

    counts = pl.pallas_call(
        kernel,
        out_shape=jax.ShapeDtypeStruct((1, num_splits * _LANE), jnp.int32),
        grid_spec=pltpu.PrefetchScalarGridSpec(
            num_scalar_prefetch=0,
            grid=(num_splits, steps_per_split),
            in_specs=[
                pl.BlockSpec((c, tile_n), lambda s, t: (0, tile_index(s, t))),
                pl.BlockSpec((1, tile_n), lambda s, t: (0, tile_index(s, t))),
            ],
            out_specs=pl.BlockSpec((1, _LANE), lambda s, t: (0, s)),
            scratch_shapes=[pltpu.VMEM((1, tile_n), jnp.int32)],
        ),
        compiler_params=pltpu.CompilerParams(
            dimension_semantics=("parallel", "arbitrary"),
            vmem_limit_bytes=cfg["vmem_limit"]),
    )(pred_t, labels)
    return _finish(counts, num_splits, n)


def _accuracy_row_major(y_pred, y_true, cfg, num_splits, tile_rows):
    n, c = y_pred.shape
    labels = y_true.astype(jnp.int32).reshape(n, 1)
    # TODO(synk): for vocab-scale C add an inner "arbitrary" grid axis over the
    # class dimension (running max / first-max-index in VMEM scratch) and feed
    # labels lane-dense; required before very large C fits v7x's 64 MiB VMEM.

    itemsize = y_pred.dtype.itemsize
    if tile_rows is None:
        c_lane = max(_round_up(c, _LANE), _LANE)
        per_row = 2 * c_lane * itemsize + 2 * c_lane * 4 + 2 * _LANE * 4
        tile_rows = cfg["tile_budget"] // per_row
    tile_rows = min(int(tile_rows), 8192)
    if tile_rows >= n or n < _SUBLANE:
        tile_rows = n
    else:
        tile_rows = max(_SUBLANE, (tile_rows // _SUBLANE) * _SUBLANE)

    num_tiles = pl.cdiv(n, tile_rows)
    num_splits = max(1, min(num_splits, num_tiles))
    steps_per_split = pl.cdiv(num_tiles, num_splits)

    def tile_index(s, t):
        return jnp.minimum(s * steps_per_split + t, num_tiles - 1)

    kernel = functools.partial(_row_major_kernel, n_total=n,
                               steps_per_split=steps_per_split,
                               upcast=_upcast_flag(cfg, y_pred.dtype))

    counts = pl.pallas_call(
        kernel,
        out_shape=jax.ShapeDtypeStruct((1, num_splits * _LANE), jnp.int32),
        grid_spec=pltpu.PrefetchScalarGridSpec(
            num_scalar_prefetch=0,
            grid=(num_splits, steps_per_split),
            in_specs=[
                pl.BlockSpec((tile_rows, c), lambda s, t: (tile_index(s, t), 0)),
                pl.BlockSpec((tile_rows, 1), lambda s, t: (tile_index(s, t), 0)),
            ],
            out_specs=pl.BlockSpec((1, _LANE), lambda s, t: (0, s)),
            scratch_shapes=[pltpu.SMEM((1,), jnp.int32)],
        ),
        compiler_params=pltpu.CompilerParams(
            dimension_semantics=("parallel", "arbitrary"),
            vmem_limit_bytes=cfg["vmem_limit"]),
    )(y_pred, labels)
    return _finish(counts, num_splits, n)


def categorical_accuracy(y_pred, y_true, *, tile_n=None, tile_rows=None,
                         num_splits=None):
    """y_pred: (N, C) logits. y_true: (N,) int labels. Returns scalar f32 accuracy."""
    _, c = y_pred.shape
    cfg = _chip_config()
    if num_splits is None:
        num_splits = cfg["num_splits"]
    if c <= _SMALL_C_MAX:
        return _accuracy_class_major(y_pred, y_true, cfg, num_splits, tile_n)
    return _accuracy_row_major(y_pred, y_true, cfg, num_splits, tile_rows)


class CategoricalAccuracy:
    def __init__(self):
        self.__name__ = 'Accuracy'
        self.pattern = '{:.3f}'

    def __call__(self, y_pred, y_true):
        return categorical_accuracy(y_pred, y_true)

    forward = __call__


def _reference(y_pred, y_true):
    return jnp.mean((jnp.argmax(y_pred, axis=1) == y_true).astype(jnp.float32))


if __name__ == "__main__":
    key = jax.random.PRNGKey(0)
    metric = CategoricalAccuracy()

    # (N, C, dtype, overrides) — small shapes exercising every code path:
    cases = [
        (16, 8, jnp.float32, {}),                                    # class-major, single tile
        (200, 10, jnp.bfloat16, dict(tile_n=128)),                   # class-major, tiled, partial tile, bf16
        (13, 8, jnp.float32, {}),                                    # N not a multiple of 8
        (520, 12, jnp.float32, dict(tile_n=128, num_splits=2)),      # class-major, 2 splits, clamped masked step
        (64, 256, jnp.float32, dict(tile_rows=32)),                  # row-major (C > 128), 2 tiles
        (40, 160, jnp.bfloat16, dict(tile_rows=16, num_splits=2)),   # row-major, partial tile + splits, bf16
    ]

    for i, (n, c, dt, kw) in enumerate(cases):
        key, kp, kt = jax.random.split(key, 3)
        y_pred = jax.random.normal(kp, (n, c), dtype=jnp.float32).astype(dt)
        y_true = jax.random.randint(kt, (n,), 0, c, dtype=jnp.int32)

        if i == 0:
            acc = metric(y_pred, y_true)
        else:
            acc = categorical_accuracy(y_pred, y_true, **kw)
        acc = jax.block_until_ready(acc)

        ref = _reference(y_pred, y_true)
        assert abs(float(acc) - float(ref)) < 1e-6, (i, float(acc), float(ref))

    print("KERNEL_OK")
</pallas_src>

<mosaic_0001>
module attributes {stable_mosaic.version = 11 : i64} {
  func.func @_class_major_kernel(%arg0: i32, %arg1: i32, %arg2: memref<8x16xf32, #tpu.memory_space<vmem>>, %arg3: memref<1x16xi32, #tpu.memory_space<vmem>>, %arg4: memref<1x128xi32, #tpu.memory_space<vmem>>, %arg5: memref<1x16xi32, #tpu.memory_space<vmem>>) attributes {dimension_semantics = [#tpu.dimension_semantics<parallel>, #tpu.dimension_semantics<arbitrary>], iteration_bounds = array<i64: 1, 1>, scalar_prefetch = 0 : i64, scratch_operands = 1 : i64, tpu.core_type = #tpu.core_type<tc>, window_params = [{transform_indices = @transform_0, window_bounds = array<i64: 8, 16>}, {transform_indices = @transform_1, window_bounds = array<i64: 1, 16>}, {transform_indices = @transform_2, window_bounds = array<i64: 1, 128>}]} {
    %c0_i32 = arith.constant 0 : i32
    %0 = arith.cmpi eq, %arg1, %c0_i32 : i32
    %1 = arith.extui %0 : i1 to i32
    %c0_i32_0 = arith.constant 0 : i32
    %2 = arith.cmpi ne, %1, %c0_i32_0 : i32
    scf.if %2 {
      %c0_i32_12 = arith.constant 0 : i32
      %31 = vector.broadcast %c0_i32_12 : i32 to vector<1x16xi32>
      %c0_13 = arith.constant 0 : index
      %c0_14 = arith.constant 0 : index
      %32 = vector.load %arg5[%c0_13, %c0_14] : memref<1x16xi32, #tpu.memory_space<vmem>>, vector<1x16xi32>
      tpu.vector_store %arg5[%c0_13, %c0_14], %31 {strides = array<i32>} : memref<1x16xi32, #tpu.memory_space<vmem>>, vector<1x16xi32>,
    } else {
    }
    %c0 = arith.constant 0 : index
    %c0_1 = arith.constant 0 : index
    %3 = vector.load %arg2[%c0, %c0_1] : memref<8x16xf32, #tpu.memory_space<vmem>>, vector<8x16xf32>
    %c0_2 = arith.constant 0 : index
    %c0_3 = arith.constant 0 : index
    %4 = vector.load %arg3[%c0_2, %c0_3] : memref<1x16xi32, #tpu.memory_space<vmem>>, vector<1x16xi32>
    %c1_i32 = arith.constant 1 : i32
    %5 = arith.muli %arg0, %c1_i32 : i32
    %6 = arith.addi %5, %arg1 : i32
    %7 = tpu.iota {dimensions = array<i32: 1>} : vector<1x16xi32>
    %c16_i32 = arith.constant 16 : i32
    %8 = arith.muli %6, %c16_i32 : i32
    %9 = vector.broadcast %8 : i32 to vector<1x16xi32>
    %10 = arith.addi %7, %9 : vector<1x16xi32>
    %c16_i32_4 = arith.constant 16 : i32
    %11 = vector.broadcast %c16_i32_4 : i32 to vector<1x16xi32>
    %12 = arith.cmpi slt, %10, %11 : vector<1x16xi32>
    %cst = arith.constant dense<0xFF800000> : vector<16xf32>
    %13 = vector.multi_reduction <maximumf>, %3, %cst [0] : vector<8x16xf32> to vector<16xf32>
    %14 = vector.shape_cast %13 : vector<16xf32> to vector<1x16xf32>
    %15 = tpu.iota {dimensions = array<i32: 0>} : vector<8x16xi32>
    %16 = vector.broadcast %14 : vector<1x16xf32> to vector<8x16xf32>
    %17 = arith.cmpf oeq, %3, %16 : vector<8x16xf32>
    %c8_i32 = arith.constant 8 : i32
    %18 = vector.broadcast %c8_i32 : i32 to vector<8x16xi32>
    %19 = arith.select %17, %15, %18 : vector<8x16xi1>, vector<8x16xi32>
    %cst_5 = arith.constant dense<2147483647> : vector<16xi32>
    %20 = vector.multi_reduction <minsi>, %19, %cst_5 [0] : vector<8x16xi32> to vector<16xi32>
    %21 = vector.shape_cast %20 : vector<16xi32> to vector<1x16xi32>
    %22 = arith.cmpi eq, %21, %4 : vector<1x16xi32>
    %23 = arith.andi %22, %12 : vector<1x16xi1>
    %c0_6 = arith.constant 0 : index
    %c0_7 = arith.constant 0 : index
    %24 = vector.load %arg5[%c0_6, %c0_7] : memref<1x16xi32, #tpu.memory_space<vmem>>, vector<1x16xi32>
    %25 = arith.extui %23 : vector<1x16xi1> to vector<1x16xi32>
    %26 = arith.addi %24, %25 : vector<1x16xi32>
    %c0_8 = arith.constant 0 : index
    %c0_9 = arith.constant 0 : index
    %27 = vector.load %arg5[%c0_8, %c0_9] : memref<1x16xi32, #tpu.memory_space<vmem>>, vector<1x16xi32>
    tpu.vector_store %arg5[%c0_8, %c0_9], %26 {strides = array<i32>} : memref<1x16xi32, #tpu.memory_space<vmem>>, vector<1x16xi32>,
    %c0_i32_10 = arith.constant 0 : i32
    %28 = arith.cmpi eq, %arg1, %c0_i32_10 : i32
    %29 = arith.extui %28 : i1 to i32
    %c0_i32_11 = arith.constant 0 : i32
    %30 = arith.cmpi ne, %29, %c0_i32_11 : i32
    scf.if %30 {
      %c0_12 = arith.constant 0 : index
      %c0_13 = arith.constant 0 : index
      %31 = vector.load %arg5[%c0_12, %c0_13] : memref<1x16xi32, #tpu.memory_space<vmem>>, vector<1x16xi32>
      %cst_14 = arith.constant dense<0> : vector<1xi32>
      %32 = vector.multi_reduction <add>, %31, %cst_14 [1] : vector<1x16xi32> to vector<1xi32>
      %33 = vector.shape_cast %32 : vector<1xi32> to vector<1x1xi32>
      %34 = vector.shape_cast %33 : vector<1x1xi32> to vector<1x1xi32>
      %35 = vector.broadcast %34 : vector<1x1xi32> to vector<1x128xi32>
      %c0_15 = arith.constant 0 : index
      %c0_16 = arith.constant 0 : index
      %36 = vector.load %arg4[%c0_15, %c0_16] : memref<1x128xi32, #tpu.memory_space<vmem>>, vector<1x128xi32>
      tpu.vector_store %arg4[%c0_15, %c0_16], %35 {strides = array<i32>} : memref<1x128xi32, #tpu.memory_space<vmem>>, vector<1x128xi32>,
    } else {
    }
    return
  }
  func.func @transform_0(%arg0: i32, %arg1: i32) -> (i32, i32) {
    %c1_i32 = arith.constant 1 : i32
    %0 = arith.muli %arg0, %c1_i32 : i32
    %1 = arith.addi %0, %arg1 : i32
    %c0_i32 = arith.constant 0 : i32
    %2 = arith.minsi %1, %c0_i32 : i32
    %c0_i32_0 = arith.constant 0 : i32
    %c0_i32_1 = arith.constant 0 : i32
    return %c0_i32_0, %2 : i32, i32
  }
  func.func @transform_1(%arg0: i32, %arg1: i32) -> (i32, i32) {
    %c1_i32 = arith.constant 1 : i32
    %0 = arith.muli %arg0, %c1_i32 : i32
    %1 = arith.addi %0, %arg1 : i32
    %c0_i32 = arith.constant 0 : i32
    %2 = arith.minsi %1, %c0_i32 : i32
    %c0_i32_0 = arith.constant 0 : i32
    %c0_i32_1 = arith.constant 0 : i32
    return %c0_i32_0, %2 : i32, i32
  }
  func.func @transform_2(%arg0: i32, %arg1: i32) -> (i32, i32) {
    %c0_i32 = arith.constant 0 : i32
    %c0_i32_0 = arith.constant 0 : i32
    return %c0_i32, %arg0 : i32, i32
  }
}

</mosaic_0001>

<bundles_post_ra>
// kernel: tpu_custom_call.1
= control target key start
LH: loop header
LB: loop body
LE: loop exit
PB: predicated region body
PF: predicated region fallthrough
CT: control target
= control target key end

     0   :  { %7 = vsyncpa [#allocation4], 0  ;;  %s237_s0 = inlined_call_operand.hbm [shape: f32[8,16], index: 0, kind: input, shape index: {}]   ;;  %s238_s1 = inlined_call_operand.vmem [shape: s32[1,16], index: 1, kind: input, shape index: {}]   ;;  %s239_s2 = inlined_call_operand.hbm [shape: s32[1,128], index: 2, kind: output, shape index: {}]  }
   0x1   :  { %8 = vsyncpa [#allocation5], 0  ;;  %s189_s9 = smov [#allocation3]   ;;  %s141_s13 = scalar_lea.hbm %s237_s0, 128 }
   0x2   :  { %s20_s10 = sshll.u32 %s189_s9, 4  ;;  %p142_p0 = scmp.ne.s32.totalorder %s237_s0, %s141_s13  ;;  %s21_s10 = int_to_ptr.vmem [resolvable:$true] %s20_s10 }
   0x3   :  { %p145_p1 = scmp.lt.u32.totalorder %s141_s13, %s237_s0 }
   0x5   :  { %p147_p2 = pnand %p145_p1, %p142_p0 }
   0x7   :  { %150 = shalt.err (!%p147_p2)
}
   0x8   :  { %s151_s18 = scalar_lea.vmem %s21_s10, 128  ;;  %p156_p4 = scmp.lt.s32.totalorder %s21_s10, %s21_s10 }
   0x9   :  { %p152_p3 = scmp.ne.s32.totalorder %s21_s10, %s151_s18  ;;  %p157_p5 = scmp.lt.s32.totalorder %s151_s18, %s151_s18 }
   0xb   :  { %p158_p6 = por %p157_p5, %p156_p4 }
   0xd   :  { %p159_p7 = pnand %p158_p6, %p152_p3 }
   0xf   :  { %162 = shalt.err (!%p159_p7)
}
  0x10   :  { %23 = dma.hbm_to_vmem [thread:$0]  %s237_s0, 128, %s21_s10, [#allocation4]  }
  0x11   :  { %185 = dma.done.wait [#allocation4], 128  }
  0x12   :  { %186 = vsyncadd [#allocation4], 4294967168  ;;  %vm60_vm0 = vcmask 122880   ;;  %v190_v0 = vmov 0   ;;  %vm71_vm1 = vcmask 130048   ;;  %v62_v1 = vld [vmem:[#allocation3] sm:$0xff]  ;;  %v65_v6 = vlaneseq }
  0x13   :  { %61 = vst.msk [vmem:[#allocation2] sm:$0x1] %vm60_vm0, %v190_v0  ;;  %v72_v2 = vsel %vm71_vm1, %v62_v1, -inf  ;;  %v63_v19 = vld [vmem:[%s238_s1] sm:$0x1]  ;;  %s191_s1 = smov [#allocation6]  }
  0x14   :  { %v73_v3 = vrot.slane %v72_v2, 4  ;;  %v80_v9 = vshrl.u32 %v65_v6, 7  ;;  %v66_v16 = vand.u32 127, %v65_v6  ;;  %s124_s22 = sshll.u32 %s191_s1, 4  ;;  %s125_s22 = int_to_ptr.vmem [resolvable:$true] %s124_s22 }
  0x15   :  { %s163_s23 = scalar_lea.vmem %s125_s22, 16  ;;  %s167_s24 = scalar_lea.vmem %s125_s22, 32 }
  0x16   :  { %v74_v4 = vmax.f32 %v72_v2, %v73_v3  ;;  %vm70_vm5 = vcmp.lt.s32.totalorder %v66_v16, 16  ;;  %p164_p8 = scmp.ne.s32.totalorder %s125_s22, %s163_s23  ;;  %p168_p9 = scmp.lt.s32.totalorder %s125_s22, %s125_s22 }
  0x17   :  { %p169_p10 = scmp.lt.s32.totalorder %s167_s24, %s163_s23 }
  0x18   :  { %v75_v5 = vrot.slane %v74_v4, 2 }
  0x19   :  { %p170_p11 = por %p169_p10, %p168_p9 }
  0x1a   :  { %v76_v7 = vmax.f32 %v74_v4, %v75_v5  ;;  %v95_v21 = vld [vmem:[#allocation2] sm:$0x1] }
  0x1b   :  { %p171_p12 = pnand %p170_p11, %p164_p8 }
  0x1c   :  { %v77_v8 = vrot.slane %v76_v7, 1 }
  0x1e   :  { %v78_v10 = vmax.f32 %v76_v7, %v77_v8 }
  0x20   :  { %vm81_vm2 = vcmp.eq.f32.partialorder %v62_v1, %v78_v10 }
  0x21   :  { %v82_v11 = vsel %vm81_vm2, %v80_v9, 8 }
  0x22   :  { %v83_v12 = vsel %vm71_vm1, %v82_v11, 2147483647 }
  0x23   :  { %v84_v13 = vrot.slane %v83_v12, 4 }
  0x25   :  { %vm85_vm3 = vcmp.lt.s32.totalorder %v83_v12, %v84_v13 }
  0x26   :  { %v86_v14 = vsel %vm85_vm3, %v83_v12, %v84_v13 }
  0x27   :  { %v87_v15 = vrot.slane %v86_v14, 2 }
  0x29   :  { %vm88_vm4 = vcmp.lt.s32.totalorder %v86_v14, %v87_v15 }
  0x2a   :  { %v89_v17 = vsel %vm88_vm4, %v86_v14, %v87_v15 }
  0x2b   :  { %v90_v18 = vrot.slane %v89_v17, 1 }
  0x2d   :  { %vm91_vm6 = vcmp.lt.s32.totalorder %v89_v17, %v90_v18 }
  0x2e   :  { %v92_v20 = vsel %vm91_vm6, %v89_v17, %v90_v18 }
  0x2f   :  { %vm93_vm7 = vcmp.eq.s32.totalorder %v92_v20, %v63_v19 }
  0x30   :  { %vm94_vm8 = vmand %vm93_vm7, %vm70_vm5 }
  0x31   :  { %v96_v22 = vsel %vm94_vm8, 1, %v190_v0 }
  0x32   :  { %v97_v23 = vadd.s32 %v96_v22, %v95_v21 }
  0x34   :  { %99 = vst.msk [vmem:[#allocation2] sm:$0x1] %vm60_vm0, %v97_v23 }
  0x3b   :  { %v103_v24 = vld [vmem:[#allocation2] sm:$0x1] }
  0x3c   :  { %v104_v25 = vsel %vm60_vm0, %v103_v24, 0 }
  0x3d   :  { %v106_v26 = vshrl.u32 %v104_v25, 16  ;;  %v105_v27 = vand.u32 65535, %v104_v25 }
  0x3f   :  { %v108_v28 = vcvt.s32.f32 %v106_v26  ;;  %v107_v29 = vcvt.s32.f32 %v105_v27 }
  0x41   :  { %111 = vadd.xlane.f32.xlu0 %v108_v28 }
  0x45   :  { %109 = vadd.xlane.f32.xlu0 %v107_v29 }
  0xce   :  { %v112_v30 = vpop.xlane.xlu0 %111 }
  0xcf   :  { %v114_v31 = vcvt.f32.s32 %v112_v30 }
  0xd1   :  { %v115_v33 = vshll.u32 %v114_v31, 16 }
  0xd2   :  { %v110_v32 = vpop.xlane.xlu0 %109 }
  0xd3   :  { %v113_v34 = vcvt.f32.s32 %v110_v32 }
  0xd5   :  { %v116_v35 = vadd.s32 %v115_v33, %v113_v34 }
  0xd7   :  { %117 = vst [vmem:[#allocation6] sm:$0x1] %v116_v35 }
  0xd8   :  { %174 = shalt.err (!%p171_p12)
}
  0xd9   :  { %s175_s27 = scalar_lea.hbm %s239_s2, 16 }
  0xda   :  { %p176_p13 = scmp.ne.s32.totalorder %s239_s2, %s175_s27  ;;  %p179_p0 = scmp.lt.u32.totalorder %s175_s27, %s239_s2 }
  0xdc   :  { %p181_p1 = pnand %p179_p0, %p176_p13 }
  0xde   :  { %184 = shalt.err (!%p181_p1)
}
  0xdf   :  { %127 = dma.vmem_to_hbm [thread:$0]  %s125_s22, 16, %s239_s2, [#allocation5]  }
  0xe0   :  { %187 = dma.done.wait [#allocation5], 16  }
  0xe1   :  { %188 = vsyncadd [#allocation5], 4294967280 }
  0xe2   :  { %131 = vsyncpa [#allocation4], 1 }
  0xe3   :  { %132 = vsyncpa [#allocation5], 1 }

</bundles_post_ra>
